<compile_context>
chip_gen: v7x
topology: tpu7x:2x2x1
jax: 0.10.0
libtpu: 0.0.40
codegen_flags: <defaults>
</compile_context>

<pallas_src>
import numpy as np
import jax
import jax.numpy as jnp
from jax.experimental import pallas as pl
from jax.experimental.pallas import tpu as pltpu


# ---------------------------------------------------------------------------
# Deterministic wavelet filter init (replaces pywt.Wavelet(wave); no file I/O).
# ---------------------------------------------------------------------------
_SQRT2 = float(np.sqrt(2.0))
_WAVELETS = {
    # pywt.Wavelet('haar'): rec_lo, rec_hi
    "haar": (
        np.array([1.0 / _SQRT2, 1.0 / _SQRT2], dtype=np.float32),
        np.array([1.0 / _SQRT2, -1.0 / _SQRT2], dtype=np.float32),
    ),
}
# TODO(synk): longer wavelets (db2, ...) need a left halo on the input length tile;
#             only K == 2 filters are supported by this kernel.

_VMEM_LIMIT = 40 * 1024 * 1024  # plenty of headroom for the tiles below, v7x-safe


# ---------------------------------------------------------------------------
# Tile selection (primary VPU path).
# ---------------------------------------------------------------------------
def _pick_tiles(B, C, L):
    """Return (TB, TMC, TNL): batch-, channel- and input-length tiles."""
    # Lane tile over the *input* length; output tile is 2x as wide (TN = 2*TNL).
    TNL = L if L <= 1024 else 512

    # Rows (batch*channel) per block: target ~8 MiB per f32 buffer set (lo + hi + out),
    # i.e. ~16 MiB double-buffered — well past the 85%-of-roofline tile size and safely
    # inside v7x's 64 MiB VMEM.
    max_rows = max(8, (512 * 1024) // TNL)
    TMC = min(C, max_rows)
    if TMC < C:                       # (8, 128) rule: sublane tile multiple of 8 or full
        TMC = max(8, (TMC // 8) * 8)
    TB = max(1, min(B, max_rows // max(TMC, 1)))

    # Keep >= 2 grid steps along the parallel axes so v7x's 2 TensorCores both get work.
    def steps(tb, tmc):
        return pl.cdiv(B, tb) * pl.cdiv(C, tmc) * pl.cdiv(L, TNL)

    while TB > 1 and steps(TB, TMC) < 2:
        TB = max(1, TB // 2)
    if steps(TB, TMC) < 2 and TMC >= 16:
        TMC = max(8, (TMC // 2 // 8) * 8)

    # TODO(synk): for tiny C with huge B, a one-time (B,2,C,L)->(2,B*C,L) transpose would
    #             restore full 8-sublane vreg packing; skipped here since it costs an
    #             extra HBM pass equal to the input traffic.
    return TB, TMC, TNL


# ---------------------------------------------------------------------------
# Primary kernel: pure VPU math + one XLU lane-interleave (no MXU, no filter operands).
#   lo/hi tiles: (TB, TMC, TNL)  ->  out tile: (TB, TMC, 2*TNL)
# ---------------------------------------------------------------------------
def _idwt_vpu(x4, rec_lo, rec_hi, B, C, L, dtype):
    L_out = 2 * L
    TB, TMC, TNL = _pick_tiles(B, C, L)
    TN = 2 * TNL
    grid = (pl.cdiv(B, TB), pl.cdiv(C, TMC), pl.cdiv(L, TNL))

    # Filter taps baked in as f32 scalars (parity with the torch module's f32 buffers).
    rlo0, rlo1 = float(rec_lo[0]), float(rec_lo[1])
    rhi0, rhi1 = float(rec_hi[0]), float(rec_hi[1])

    def kernel(lo_ref, hi_ref, out_ref):
        lo = lo_ref[...].astype(jnp.float32)      # keep filter math in f32
        hi = hi_ref[...].astype(jnp.float32)
        even = lo * rlo0 + hi * rhi0              # -> output positions 2l
        odd = lo * rlo1 + hi * rhi1               # -> output positions 2l + 1
        # One cross-lane interleave (XLU packing): (..., TNL, 2) -> (..., 2*TNL),
        # producing a lane-dense output tile (NOT a (.., TNL, 2) out block).
        out = jnp.stack([even, odd], axis=-1).reshape(out_ref.shape)
        out_ref[...] = out.astype(out_ref.dtype)

    return pl.pallas_call(
        kernel,
        out_shape=jax.ShapeDtypeStruct((B, C, L_out), dtype),
        grid_spec=pltpu.PrefetchScalarGridSpec(
            num_scalar_prefetch=0,
            grid=grid,
            in_specs=[
                # low sub-band rows: x4[b-th batch tile, 0, i-th C tile, j-th L tile]
                pl.BlockSpec((TB, pl.Squeezed(), TMC, TNL),
                             lambda b, i, j: (b, 0, i, j)),
                # high sub-band rows
                pl.BlockSpec((TB, pl.Squeezed(), TMC, TNL),
                             lambda b, i, j: (b, 1, i, j)),
            ],
            out_specs=pl.BlockSpec((TB, TMC, TN), lambda b, i, j: (b, i, j)),
        ),
        compiler_params=pltpu.CompilerParams(
            dimension_semantics=("parallel", "parallel", "parallel"),
            vmem_limit_bytes=_VMEM_LIMIT,
        ),
    )(x4, x4)


# ---------------------------------------------------------------------------
# Fallback kernel (proven v2 path): banded MXU matmuls do the interleave.
# Only used if the XLU interleave above fails to lower on the local toolchain.
# ---------------------------------------------------------------------------
def _banded_block(filt, tnl, tn):
    """Bb[p, 2p + k] = filt[k], shape (tnl, tn). Exact for K == 2 (no halo)."""
    K = filt.shape[0]
    m = np.zeros((tnl, tn), dtype=np.float32)
    for p in range(tnl):
        for k in range(K):
            t = 2 * p + k
            if t < tn:
                m[p, t] = filt[k]
    return m


def _pick_lane_tile_mxu(l_out):
    for t in (256, 128):
        if l_out % t == 0:
            return t, False
    if l_out <= 1024:
        return l_out, False
    return 256, True


def _idwt_mxu(x4, rec_lo, rec_hi, B, C, L, dtype):
    L_out = 2 * L
    TN, need_mask = _pick_lane_tile_mxu(L_out)
    TNL = TN // 2
    TMC = C if C <= 512 else 512
    # Filter blocks stay f32 regardless of x dtype (correctness-review note).
    mlo = jnp.asarray(_banded_block(rec_lo, TNL, TN))
    mhi = jnp.asarray(_banded_block(rec_hi, TNL, TN))
    grid = (B, pl.cdiv(C, TMC), pl.cdiv(L_out, TN))

    def kernel(lo_ref, hi_ref, mlo_ref, mhi_ref, out_ref):
        lo = lo_ref[...]
        hi = hi_ref[...]
        if need_mask:
            # Ragged tail: zero garbage input lanes so they cannot leak through the
            # contraction into valid output lanes.
            j = pl.program_id(2)
            lane = jax.lax.broadcasted_iota(jnp.int32, lo.shape, 1)
            valid = (j * TNL + lane) < L
            lo = jnp.where(valid, lo, jnp.zeros_like(lo))
            hi = jnp.where(valid, hi, jnp.zeros_like(hi))
        acc = jnp.dot(lo, mlo_ref[...], preferred_element_type=jnp.float32)
        acc = acc + jnp.dot(hi, mhi_ref[...], preferred_element_type=jnp.float32)
        out_ref[...] = acc.astype(out_ref.dtype)

    return pl.pallas_call(
        kernel,
        out_shape=jax.ShapeDtypeStruct((B, C, L_out), dtype),
        grid_spec=pltpu.PrefetchScalarGridSpec(
            num_scalar_prefetch=0,
            grid=grid,
            in_specs=[
                pl.BlockSpec((pl.Squeezed(), pl.Squeezed(), TMC, TNL),
                             lambda b, i, j: (b, 0, i, j)),
                pl.BlockSpec((pl.Squeezed(), pl.Squeezed(), TMC, TNL),
                             lambda b, i, j: (b, 1, i, j)),
                # tiny constant filter blocks, resident (constant block index)
                pl.BlockSpec((TNL, TN), lambda b, i, j: (0, 0)),
                pl.BlockSpec((TNL, TN), lambda b, i, j: (0, 0)),
            ],
            out_specs=pl.BlockSpec((pl.Squeezed(), TMC, TN),
                                   lambda b, i, j: (b, i, j)),
        ),
        compiler_params=pltpu.CompilerParams(
            dimension_semantics=("parallel", "parallel", "parallel"),
            vmem_limit_bytes=_VMEM_LIMIT,
        ),
    )(x4, x4, mlo, mhi)


# ---------------------------------------------------------------------------
# Public wrapper (forward of IDWT_1D).
# ---------------------------------------------------------------------------
def idwt_1d(x, wave="haar"):
    """x: (B, 2C, L) -> (B, C, (L-1)*2 + K)."""
    rec_lo, rec_hi = _WAVELETS[wave]
    assert int(rec_lo.shape[0]) == 2, "only K == 2 (haar) wavelets are supported"
    B, C2, L = x.shape
    assert C2 % 2 == 0, "channel dim must be 2*C (low | high sub-bands)"
    C = C2 // 2

    # Free (copy-less) view: (B, 2, C, L); sub-band axis selected via the index_maps.
    x4 = x.reshape(B, 2, C, L)

    try:
        out = _idwt_vpu(x4, rec_lo, rec_hi, B, C, L, x.dtype)
        jax.block_until_ready(out)
        return out
    except Exception:
        # Safety net: banded-MXU interleave (known to lower everywhere).
        return _idwt_mxu(x4, rec_lo, rec_hi, B, C, L, x.dtype)


# ---------------------------------------------------------------------------
# Pure-numpy reference (mirrors conv_transpose1d(stride=2, groups=C) semantics).
# ---------------------------------------------------------------------------
def _ref_idwt_1d(x_np, wave="haar"):
    rec_lo, rec_hi = _WAVELETS[wave]
    K = rec_lo.shape[0]
    B, C2, L = x_np.shape
    C = C2 // 2
    L_out = (L - 1) * 2 + K
    out = np.zeros((B, C, L_out), dtype=np.float32)
    for b in range(B):
        for g in range(C):
            for l in range(L):
                for k in range(K):
                    out[b, g, 2 * l + k] += (
                        x_np[b, g, l] * rec_lo[k] + x_np[b, C + g, l] * rec_hi[k]
                    )
    return out


if __name__ == "__main__":
    key = jax.random.PRNGKey(0)
    B, C, L = 2, 4, 16                      # input x: (B, 2C, L) = (2, 8, 16)
    x = jax.random.normal(key, (B, 2 * C, L), dtype=jnp.float32)

    out = idwt_1d(x, wave="haar")
    out = jax.block_until_ready(out)

    ref = _ref_idwt_1d(np.asarray(x), wave="haar")
    np.testing.assert_allclose(np.asarray(out), ref, rtol=1e-5, atol=1e-5)

    print("KERNEL_OK")
</pallas_src>

<mosaic_0001>
module attributes {stable_mosaic.version = 11 : i64} {
  func.func @kernel(%arg0: i32, %arg1: i32, %arg2: i32, %arg3: memref<1x1x4x16xf32, #tpu.memory_space<vmem>>, %arg4: memref<1x1x4x16xf32, #tpu.memory_space<vmem>>, %arg5: memref<1x4x32xf32, #tpu.memory_space<vmem>>) attributes {dimension_semantics = [#tpu.dimension_semantics<parallel>, #tpu.dimension_semantics<parallel>, #tpu.dimension_semantics<parallel>], iteration_bounds = array<i64: 2, 1, 1>, scalar_prefetch = 0 : i64, scratch_operands = 0 : i64, tpu.core_type = #tpu.core_type<tc>, window_params = [{transform_indices = @transform_0, window_bounds = array<i64: 1, 1, 4, 16>}, {transform_indices = @transform_1, window_bounds = array<i64: 1, 1, 4, 16>}, {transform_indices = @transform_2, window_bounds = array<i64: 1, 4, 32>}]} {
    %c0 = arith.constant 0 : index
    %c0_0 = arith.constant 0 : index
    %c0_1 = arith.constant 0 : index
    %c0_2 = arith.constant 0 : index
    %0 = vector.load %arg3[%c0, %c0_0, %c0_1, %c0_2] : memref<1x1x4x16xf32, #tpu.memory_space<vmem>>, vector<1x1x4x16xf32>
    %1 = vector.shape_cast %0 : vector<1x1x4x16xf32> to vector<1x4x16xf32>
    %c0_3 = arith.constant 0 : index
    %c0_4 = arith.constant 0 : index
    %c0_5 = arith.constant 0 : index
    %c0_6 = arith.constant 0 : index
    %2 = vector.load %arg4[%c0_3, %c0_4, %c0_5, %c0_6] : memref<1x1x4x16xf32, #tpu.memory_space<vmem>>, vector<1x1x4x16xf32>
    %3 = vector.shape_cast %2 : vector<1x1x4x16xf32> to vector<1x4x16xf32>
    %cst = arith.constant 0.707106769 : f32
    %4 = vector.broadcast %cst : f32 to vector<1x4x16xf32>
    %5 = arith.mulf %1, %4 : vector<1x4x16xf32>
    %cst_7 = arith.constant 0.707106769 : f32
    %6 = vector.broadcast %cst_7 : f32 to vector<1x4x16xf32>
    %7 = arith.mulf %3, %6 : vector<1x4x16xf32>
    %8 = arith.addf %5, %7 : vector<1x4x16xf32>
    %cst_8 = arith.constant 0.707106769 : f32
    %9 = vector.broadcast %cst_8 : f32 to vector<1x4x16xf32>
    %10 = arith.mulf %1, %9 : vector<1x4x16xf32>
    %cst_9 = arith.constant -0.707106769 : f32
    %11 = vector.broadcast %cst_9 : f32 to vector<1x4x16xf32>
    %12 = arith.mulf %3, %11 : vector<1x4x16xf32>
    %13 = arith.addf %10, %12 : vector<1x4x16xf32>
    %14 = vector.shape_cast %8 : vector<1x4x16xf32> to vector<1x4x16x1xf32>
    %15 = vector.shape_cast %13 : vector<1x4x16xf32> to vector<1x4x16x1xf32>
    %16 = tpu.concatenate %14, %15 in 3 : vector<1x4x16x1xf32>, vector<1x4x16x1xf32> -> vector<1x4x16x2xf32>
    %17 = vector.shape_cast %16 : vector<1x4x16x2xf32> to vector<1x4x32xf32>
    %c0_10 = arith.constant 0 : index
    %c0_11 = arith.constant 0 : index
    %c0_12 = arith.constant 0 : index
    %18 = vector.load %arg5[%c0_10, %c0_11, %c0_12] : memref<1x4x32xf32, #tpu.memory_space<vmem>>, vector<1x4x32xf32>
    tpu.vector_store %arg5[%c0_10, %c0_11, %c0_12], %17 {strides = array<i32>} : memref<1x4x32xf32, #tpu.memory_space<vmem>>, vector<1x4x32xf32>,
    return
  }
  func.func @transform_0(%arg0: i32, %arg1: i32, %arg2: i32) -> (i32, i32, i32, i32) {
    %c0_i32 = arith.constant 0 : i32
    %c0_i32_0 = arith.constant 0 : i32
    return %arg0, %c0_i32, %arg1, %arg2 : i32, i32, i32, i32
  }
  func.func @transform_1(%arg0: i32, %arg1: i32, %arg2: i32) -> (i32, i32, i32, i32) {
    %c1_i32 = arith.constant 1 : i32
    %c0_i32 = arith.constant 0 : i32
    return %arg0, %c1_i32, %arg1, %arg2 : i32, i32, i32, i32
  }
  func.func @transform_2(%arg0: i32, %arg1: i32, %arg2: i32) -> (i32, i32, i32) {
    %c0_i32 = arith.constant 0 : i32
    return %arg0, %arg1, %arg2 : i32, i32, i32
  }
}

module attributes {stable_mosaic.version = 11 : i64} {
  func.func @kernel(%arg0: i32, %arg1: i32, %arg2: i32, %arg3: memref<1x1x4x16xf32, #tpu.memory_space<vmem>>, %arg4: memref<1x1x4x16xf32, #tpu.memory_space<vmem>>, %arg5: memref<16x32xf32, #tpu.memory_space<vmem>>, %arg6: memref<16x32xf32, #tpu.memory_space<vmem>>, %arg7: memref<1x4x32xf32, #tpu.memory_space<vmem>>) attributes {dimension_semantics = [#tpu.dimension_semantics<parallel>, #tpu.dimension_semantics<parallel>, #tpu.dimension_semantics<parallel>], iteration_bounds = array<i64: 2, 1, 1>, scalar_prefetch = 0 : i64, scratch_operands = 0 : i64, tpu.core_type = #tpu.core_type<tc>, window_params = [{transform_indices = @transform_0, window_bounds = array<i64: 1, 1, 4, 16>}, {transform_indices = @transform_1, window_bounds = array<i64: 1, 1, 4, 16>}, {pipeline_mode = #tpu.pipeline_mode<synchronous>, transform_indices = @transform_2, window_bounds = array<i64: 16, 32>}, {pipeline_mode = #tpu.pipeline_mode<synchronous>, transform_indices = @transform_3, window_bounds = array<i64: 16, 32>}, {transform_indices = @transform_4, window_bounds = array<i64: 1, 4, 32>}]} {
    %c0 = arith.constant 0 : index
    %c0_0 = arith.constant 0 : index
    %c0_1 = arith.constant 0 : index
    %c0_2 = arith.constant 0 : index
    %0 = vector.load %arg3[%c0, %c0_0, %c0_1, %c0_2] : memref<1x1x4x16xf32, #tpu.memory_space<vmem>>, vector<1x1x4x16xf32>
    %1 = vector.shape_cast %0 : vector<1x1x4x16xf32> to vector<4x16xf32>
    %c0_3 = arith.constant 0 : index
    %c0_4 = arith.constant 0 : index
    %c0_5 = arith.constant 0 : index
    %c0_6 = arith.constant 0 : index
    %2 = vector.load %arg4[%c0_3, %c0_4, %c0_5, %c0_6] : memref<1x1x4x16xf32, #tpu.memory_space<vmem>>, vector<1x1x4x16xf32>
    %3 = vector.shape_cast %2 : vector<1x1x4x16xf32> to vector<4x16xf32>
    %c0_7 = arith.constant 0 : index
    %c0_8 = arith.constant 0 : index
    %4 = vector.load %arg5[%c0_7, %c0_8] : memref<16x32xf32, #tpu.memory_space<vmem>>, vector<16x32xf32>
    %cst = arith.constant dense<0.000000e+00> : vector<4x32xf32>
    %5 = tpu.matmul %1, %4, %cst {dimension_numbers = #tpu.dot_dimension_numbers<[1], [0], [0], [1], [0, 0, 1, 1], [], []>} : vector<4x16xf32>, vector<16x32xf32>, vector<4x32xf32> -> vector<4x32xf32>
    %c0_9 = arith.constant 0 : index
    %c0_10 = arith.constant 0 : index
    %6 = vector.load %arg6[%c0_9, %c0_10] : memref<16x32xf32, #tpu.memory_space<vmem>>, vector<16x32xf32>
    %cst_11 = arith.constant dense<0.000000e+00> : vector<4x32xf32>
    %7 = tpu.matmul %3, %6, %cst_11 {dimension_numbers = #tpu.dot_dimension_numbers<[1], [0], [0], [1], [0, 0, 1, 1], [], []>} : vector<4x16xf32>, vector<16x32xf32>, vector<4x32xf32> -> vector<4x32xf32>
    %8 = arith.addf %5, %7 : vector<4x32xf32>
    %c0_12 = arith.constant 0 : index
    %c0_13 = arith.constant 0 : index
    %c0_14 = arith.constant 0 : index
    %9 = vector.load %arg7[%c0_12, %c0_13, %c0_14] : memref<1x4x32xf32, #tpu.memory_space<vmem>>, vector<1x4x32xf32>
    %10 = vector.shape_cast %9 : vector<1x4x32xf32> to vector<4x32xf32>
    %11 = vector.shape_cast %8 : vector<4x32xf32> to vector<1x4x32xf32>
    tpu.vector_store %arg7[%c0_12, %c0_13, %c0_14], %11 {strides = array<i32>} : memref<1x4x32xf32, #tpu.memory_space<vmem>>, vector<1x4x32xf32>,
    return
  }
  func.func @transform_0(%arg0: i32, %arg1: i32, %arg2: i32) -> (i32, i32, i32, i32) {
    %c0_i32 = arith.constant 0 : i32
    %c0_i32_0 = arith.constant 0 : i32
    return %arg0, %c0_i32, %arg1, %arg2 : i32, i32, i32, i32
  }
  func.func @transform_1(%arg0: i32, %arg1: i32, %arg2: i32) -> (i32, i32, i32, i32) {
    %c1_i32 = arith.constant 1 : i32
    %c0_i32 = arith.constant 0 : i32
    return %arg0, %c1_i32, %arg1, %arg2 : i32, i32, i32, i32
  }
  func.func @transform_2(%arg0: i32, %arg1: i32, %arg2: i32) -> (i32, i32) {
    %c0_i32 = arith.constant 0 : i32
    %c0_i32_0 = arith.constant 0 : i32
    %c0_i32_1 = arith.constant 0 : i32
    return %c0_i32, %c0_i32_0 : i32, i32
  }
  func.func @transform_3(%arg0: i32, %arg1: i32, %arg2: i32) -> (i32, i32) {
    %c0_i32 = arith.constant 0 : i32
    %c0_i32_0 = arith.constant 0 : i32
    %c0_i32_1 = arith.constant 0 : i32
    return %c0_i32, %c0_i32_0 : i32, i32
  }
  func.func @transform_4(%arg0: i32, %arg1: i32, %arg2: i32) -> (i32, i32, i32) {
    %c0_i32 = arith.constant 0 : i32
    return %arg0, %arg1, %arg2 : i32, i32, i32
  }
}

</mosaic_0001>

<bundles_post_ra>
// kernel: tpu_custom_call.1
= control target key start
LH: loop header
LB: loop body
LE: loop exit
PB: predicated region body
PF: predicated region fallthrough
CT: control target
= control target key end

     0   :  { %7 = vsyncpa [#allocation3], 0  ;;  %s1231_s0 = inlined_call_operand.hbm [shape: f32[2,2,4,16], index: 0, kind: input, shape index: {}]   ;;  %s1232_s1 = inlined_call_operand.hbm [shape: f32[2,2,4,16], index: 1, kind: input, shape index: {}]   ;;  %s1233_s2 = inlined_call_operand.hbm [shape: f32[2,4,32], index: 2, kind: output, shape index: {}]  }
   0x1   :  { %9 = vsyncpa [#allocation3 + $0x1], 0 }
   0x2   :  { %10 = vsyncpa [#allocation6], 0 }
   0x3   :  { %12 = vsyncpa [#allocation6 + $0x1], 0 }
   0x4   :  { %13 = vsyncpa [#allocation4], 0 }
   0x5   :  { %15 = vsyncpa [#allocation4 + $0x1], 0  ;;  %s985_s9 = smov 0   ;;  %s987_s10 = smov 0  }
   0x6   :  { %s989_s11 = smov 0   ;;  %s991_s12 = smov 0  }
   0x7   :  { %s993_s13 = smov 0   ;;  %s995_s14 = smov 0  }
   0x8 LB: > { %s695_s15 = sadd.s32 4294967295, %s947_s14   ;;  %s696_s16 = sadd.s32 4294967294, %s947_s14   ;;  %s947_s14 = sphi %s995_s14, %s21_s14   ;;  %s943_s13 = sphi %s993_s13, %s1253_s13   ;;  %s939_s12 = sphi %s991_s12, %s1252_s12   ;;  %s935_s11 = sphi %s989_s11, %s1251_s11   ;;  %s931_s10 = sphi %s987_s10, %s1250_s10   ;;  %s927_s9 = sphi %s985_s9, %s1249_s9  }
   0x9   : > { %s40_s17 = sadd.s32 1, %s943_s13  ;;  %s51_s18 = sadd.s32 1, %s935_s11 }
   0xa   : > { %p42_p0 = scmp.ge.s32.totalorder %s40_s17, 2  ;;  %p58_p1 = scmp.ne.s32.totalorder %s935_s11, %s931_s10 }
   0xb   : > { %p59_p2 = scmp.eq.s32.totalorder %s947_s14, 0  ;;  %p64_p3 = scmp.ne.s32.totalorder %s931_s10, %s927_s9 }
   0xc   : > { %s1255_s17 = smov (%p42_p0, %s40_s17), 0  ;;  %p65_p5 = scmp.eq.s32.totalorder %s695_s15, 0 }
   0xd   : > { %p1026_p4 = por %p59_p2, %p58_p1  ;;  %s44_s20 = ssub.s32 %s943_s13, %s1255_s17 }
   0xe   : > { %p122_p6 = scmp.eq.s32.totalorder %s695_s15, 1  ;;  %p49_p7 = scmp.eq.s32.totalorder %s44_s20, 0 }
   0xf   : > { %p1032_p8 = por %p65_p5, %p64_p3  ;;  %p128_p10 = scmp.eq.s32.totalorder %s696_s16, 1 }
  0x10   : > { %p1036_p9 = por %p122_p6, %p58_p1  ;;  %p732_p13 = scmp.lt.s32.totalorder %s947_s14, 2 }
  0x11   : > { %s1237_s21 = scalar_select %p1032_p8, 1, 0 }
  0x12   : > { %s1238_s22 = scalar_select %p1036_p9, 1, 0 }
  0x13   : > { %s1041_s23 = scalar_select %p49_p7, %s935_s11, %s51_s18  }
  0x14   : > { %p1043_p11 = por %p128_p10, %p64_p3  ;;  %s1050_s25 = sand.u32 1, %s935_s11  }
  0x15   : > { %s699_s26 = sshll.u32 %s1050_s25, 2  ;;  %s713_s27 = sshll.u32 %s943_s13, 7 }
  0x16   : > { %s1239_s24 = scalar_select %p1043_p11, 1, 0 }
  0x17   : > { %s1059_s30 = scalar_lea.hbm %s1231_s0, %s713_s27  ;;  %s152_s3 = scalar_lea.vmem [#allocation2], %s699_s26 }
  0x18   : > { %s162_s4 = sshll.u32 %s152_s3, 4  ;;  %p1067_p0 = pnand %p732_p13, %p1026_p4  ;;  %s1063_s4 = int_to_ptr.vmem [resolvable:$true] %s162_s4 }
  0x19   : > { %s149_s6 = scalar_lea.sflag [#allocation3], %s1050_s25  ;;  %s800_s7 = scalar_lea.hbm %s1059_s30, 64 }
  0x1a   : > { %p801_p3 = scmp.ne.s32.totalorder %s1059_s30, %s800_s7  ;;  %p802_p5 = pneg %p1067_p0 }
  0x1b   : > { %s805_s16 = scalar_lea.hbm %s1231_s0, 256  ;;  %p806_p4 = scmp.lt.u32.totalorder %s1059_s30, %s1231_s0 }
  0x1c   : > { %p803_p6 = pnand %p802_p5, %p801_p3  ;;  %p807_p10 = scmp.lt.u32.totalorder %s805_s16, %s800_s7 }
  0x1d   : > { %p809_p12 = scmp.lt.u32.totalorder %s800_s7, %s1059_s30 }
  0x1e   : > { %p804_p7 = pneg %p803_p6  ;;  %p808_p13 = por %p807_p10, %p806_p4 }
  0x20   : > { %p810_p1 = por %p809_p12, %p808_p13 }
  0x22   : > { %p811_p2 = pnand %p810_p1, %p804_p7 }
  0x24   : > { %814 = shalt.err (!%p811_p2)
}
  0x25   : > { %s815_s20 = scalar_lea.vmem %s1063_s4, 64  ;;  %s949_s28 = smov [#allocation2]  }
  0x26   : > { %p816_p3 = scmp.ne.s32.totalorder %s1063_s4, %s815_s20  ;;  %s820_s29 = sshll.u32 %s949_s28, 4  ;;  %s821_s29 = int_to_ptr.vmem [resolvable:$false] %s820_s29 }
  0x27   : > { %s822_s3 = scalar_lea.vmem %s821_s29, 128  ;;  %p823_p9 = scmp.lt.s32.totalorder %s1063_s4, %s821_s29 }
  0x28   : > { %p818_p6 = pnand %p816_p3, %p802_p5  ;;  %p824_p4 = scmp.lt.s32.totalorder %s822_s3, %s815_s20 }
  0x2a   : > { %p819_p11 = pneg %p818_p6  ;;  %p825_p10 = por %p824_p4, %p823_p9 }
  0x2c   : > { %p826_p12 = pnand %p825_p10, %p819_p11 }
  0x2e   : > { %829 = shalt.err (!%p826_p12)
}
  0x2f   : > { %724 = dma.hbm_to_vmem [thread:$0]  (!%p1067_p0), %s1059_s30, 64, %s1063_s4, %s149_s6  }
  0x30   : > { %p1241_p1 = scmp.lt.s32.totalorder %s947_s14, 3  ;;  %p1242_p2 = scmp.ge.s32.totalorder %s947_s14, 1 }
  0x31   : > { %s624_s16 = scalar_lea.hbm %s1232_s1, %s713_s27  ;;  %s173_s18 = scalar_lea.vmem [#allocation5], %s699_s26 }
  0x32   : > { %p1103_p7 = pnand %p1242_p2, %p1241_p1  ;;  %s184_s19 = sshll.u32 %s173_s18, 4  ;;  %s185_s19 = int_to_ptr.vmem [resolvable:$true] %s184_s19 }
  0x33   : > { %s1114_s20 = scalar_lea.hbm %s624_s16, 64  ;;  %s170_s30 = scalar_lea.sflag [#allocation6], %s1050_s25 }
  0x34   : > { %s1243_s7 = scalar_select %p1103_p7, 1, 0 }
  0x35   : > { %s860_s4 = scalar_lea.hbm %s624_s16, 128  ;;  %s835_s27 = scalar_lea.hbm %s1232_s1, 256 }
  0x36   : > { %p831_p9 = scmp.ne.s32.totalorder %s1114_s20, %s860_s4  ;;  %p836_p3 = scmp.lt.u32.totalorder %s1114_s20, %s1232_s1 }
  0x37   : > { %p837_p6 = scmp.lt.u32.totalorder %s835_s27, %s860_s4  ;;  %p839_p10 = scmp.lt.u32.totalorder %s860_s4, %s1114_s20 }
  0x38   : > { %p833_p11 = pnand %p831_p9, %p802_p5 }
  0x39   : > { %p838_p4 = por %p837_p6, %p836_p3 }
  0x3a   : > { %p834_p13 = pneg %p833_p11 }
  0x3b   : > { %p840_p12 = por %p839_p10, %p838_p4 }
  0x3d   : > { %p841_p1 = pnand %p840_p12, %p834_p13 }
  0x3f   : > { %844 = shalt.err (!%p841_p1)
}
  0x40   : > { %s845_s25 = scalar_lea.vmem %s185_s19, 64  ;;  %s950_s3 = smov [#allocation5]  }
  0x41   : > { %p846_p2 = scmp.ne.s32.totalorder %s185_s19, %s845_s25  ;;  %s850_s8 = sshll.u32 %s950_s3, 4  ;;  %s851_s8 = int_to_ptr.vmem [resolvable:$false] %s850_s8 }
  0x42   : > { %s852_s15 = scalar_lea.vmem %s851_s8, 128  ;;  %p853_p8 = scmp.lt.s32.totalorder %s185_s19, %s851_s8 }
  0x43   : > { %p848_p9 = pnand %p846_p2, %p802_p5  ;;  %p854_p7 = scmp.lt.s32.totalorder %s852_s15, %s845_s25 }
  0x45   : > { %p849_p11 = pneg %p848_p9  ;;  %p855_p3 = por %p854_p7, %p853_p8 }
  0x47   : > { %p856_p6 = pnand %p855_p3, %p849_p11 }
  0x49   : > { %859 = shalt.err (!%p856_p6)
}
  0x4a   : > { %727 = dma.hbm_to_vmem [thread:$0]  (!%p1067_p0), %s1114_s20, 64, %s185_s19, %s170_s30  }
  0x4b   : > { %p1244_p13 = scmp.ne.s32.totalorder %s1243_s7, 0 }
  0x4c   : > { %s1138_s16 = sand.u32 (!%p1244_p13), 1, %s931_s10   ;;  %p1245_p8 = scmp.ne.s32.totalorder (!%p1244_p13), %s1237_s21, 0 }
  0x4d   : > { %193 = sbr.rel (%p1244_p13) target bundleno = 391 (0x187), region = 28  ;;  %s1141_s18 = sshll.u32 (!%p1244_p13), %s1138_s16, 2 }
  0x4e   : > { %s196_s4 = scalar_lea.sflag (!%p1244_p13), [#allocation3], %s1138_s16  ;;  %s199_s6 = scalar_lea.vmem (!%p1244_p13), [#allocation2], %s1141_s18 }
  0x54   : > { %914 = dma.done.wait (%p1245_p8), %s196_s4, 64  }
  0x55   : > { %916 = vsyncadd (%p1245_p8), %s196_s4, 4294967232  ;;  %s205_s5 = scalar_lea.sflag [#allocation6], %s1138_s16  ;;  %s208_s7 = scalar_lea.vmem [#allocation5], %s1141_s18 }
  0x56   : > { %918 = dma.done.wait (%p1245_p8), %s205_s5, 64  }
  0x57   : > { %920 = vsyncadd (%p1245_p8), %s205_s5, 4294967232  ;;  %v241_v0 = vlaneseq  ;;  %v234_v2 = vld [vmem:[%s199_s6] sm:$0xf]  ;;  %v235_v3 = vld [vmem:[%s208_s7] sm:$0xf]  ;;  %vm329_vm0 = vcmask 7168  }
  0x58   : > { %v236_v4 = vmul.f32 0.70710677, %v234_v2  ;;  %v237_v5 = vmul.f32 0.70710677, %v235_v3  ;;  %v239_v11 = vmul.f32 -0.70710677, %v235_v3 }
  0x59   : > { %v242_v1 = vshrl.u32 %v241_v0, 7  ;;  %v951_v25 = vmov 1983009808   ;;  %v952_v27 = vmov 1934713408   ;;  %s953_s21 = smov 4  }
  0x5a   : > { %v238_v8 = vadd.f32 %v237_v5, %v236_v4  ;;  %v240_v16 = vadd.f32 %v239_v11, %v236_v4  ;;  %v341_v26 = vunpack.c.l.s4 %v951_v25  ;;  %v373_v28 = vunpack.c.l.s4 %v952_v27  ;;  %s955_s19 = smov 2   ;;  %s956_s20 = smov 8  }
  0x5b   : > { %v265_v6 = vsub.s32 2, %v242_v1  ;;  %v243_v7 = vsub.s32 0, %v242_v1  ;;  %v276_v9 = vsub.s32 3, %v242_v1  ;;  %v254_v10 = vsub.s32 1, %v242_v1  ;;  %s957_s30 = smov 6   ;;  %s958_s28 = smov 12  }
  0x5c   : > { %v342_v31 = vunpack.c.0.s8 %v341_v26  ;;  %v374_v32 = vunpack.c.0.s8 %v373_v28  ;;  %v954_v58 = vmov 0.0   ;;  %s959_s27 = smov 10   ;;  %s960_s29 = smov 14   ;;  %vm534_vm1 = vcmask 15360  }
  0x5d   : > { %v266_v12 = vrot.slane %v238_v8, %v265_v6  ;;  %v244_v13 = vrot.slane %v238_v8, %v243_v7  ;;  %v277_v14 = vrot.slane %v238_v8, %v276_v9  ;;  %v255_v15 = vrot.slane %v238_v8, %v254_v10  ;;  %s961_s26 = smov 16   ;;  %s962_s25 = smov 18  }
  0x5e   : > { %v299_v17 = vrot.slane %v240_v16, %v254_v10  ;;  %v288_v18 = vrot.slane %v240_v16, %v243_v7  ;;  %v321_v19 = vrot.slane %v240_v16, %v276_v9  ;;  %v310_v20 = vrot.slane %v240_v16, %v265_v6  ;;  %s963_s3 = smov 20   ;;  %s964_s8 = smov 22  }
  0x5f   : > { %268 = vbcast.lane.b32.xlu1 %v266_v12, 256  ;;  %246 = vbcast.lane.b32.xlu0 %v244_v13, 256  ;;  %v345_v33 = vsub.s32 %v342_v31, %v242_v1  ;;  %v1159_v44 = vsub.s32 %v374_v32, %v242_v1  ;;  %s965_s15 = smov 24   ;;  %s966_s4 = smov 26   ;;  %vm536_vm2 = vcmask 31744   ;;  %vm538_vm3 = vcmask 48128  }
  0x60   : > { %s967_s6 = smov 28   ;;  %s968_s5 = smov 30   ;;  %vm540_vm4 = vcmask 64512   ;;  %vm542_vm5 = vcmask 80896   ;;  %vm544_vm6 = vcmask 97280   ;;  %vm546_vm7 = vcmask 113664  }
  0x61   : > { %vm548_vm8 = vcmask 130048   ;;  %vm550_vm9 = vcmask 146432   ;;  %vm552_vm10 = vcmask 162816   ;;  %vm554_vm11 = vcmask 179200   ;;  %s710_s7 = sshll.u32 %s939_s12, 6  ;;  %s567_s12 = scalar_lea.sflag [#allocation4], %s1138_s16 }
  0x62   : > { %vm556_vm12 = vcmask 195584   ;;  %vm558_vm13 = vcmask 211968   ;;  %vm560_vm14 = vcmask 228352   ;;  %vm562_vm15 = vcmask 244736   ;;  %p1246_p5 = scmp.ne.s32.totalorder %s1238_s22, 0 }
  0x63   : > { %279 = vbcast.lane.b32.xlu1 %v277_v14, 256  ;;  %257 = vbcast.lane.b32.xlu0 %v255_v15, 256 }
  0x67   : > { %301 = vbcast.lane.b32.xlu1 %v299_v17, 256  ;;  %290 = vbcast.lane.b32.xlu0 %v288_v18, 256 }
  0x6b   : > { %323 = vbcast.lane.b32.xlu1 %v321_v19, 256  ;;  %312 = vbcast.lane.b32.xlu0 %v310_v20, 256 }
  0x6f   : > { %261 = vbcast.lane.b32.xlu1 %v255_v15, 264  ;;  %250 = vbcast.lane.b32.xlu0 %v244_v13, 264 }
  0x73   : > { %283 = vbcast.lane.b32.xlu1 %v277_v14, 264  ;;  %272 = vbcast.lane.b32.xlu0 %v266_v12, 264 }
  0x77   : > { %305 = vbcast.lane.b32.xlu1 %v299_v17, 264  ;;  %294 = vbcast.lane.b32.xlu0 %v288_v18, 264 }
  0x7b   : > { %327 = vbcast.lane.b32.xlu1 %v321_v19, 264  ;;  %316 = vbcast.lane.b32.xlu0 %v310_v20, 264 }
  0xd1   : > { %v269_v21 = vpop.permute.xlu1 %268  ;;  %v247_v22 = vpop.permute.xlu0 %246 }
  0xd5   : > { %v280_v23 = vpop.permute.xlu1 %279  ;;  %v258_v24 = vpop.permute.xlu0 %257 }
  0xd9   : > { %v302_v29 = vpop.permute.xlu1 %301  ;;  %v291_v30 = vpop.permute.xlu0 %290 }
  0xda   : > { %v332_v36 = vsel %vm329_vm0, %v258_v24, %v302_v29  ;;  %v330_v37 = vsel %vm329_vm0, %v247_v22, %v291_v30 }
  0xdd   : > { %v324_v34 = vpop.permute.xlu1 %323  ;;  %v313_v35 = vpop.permute.xlu0 %312 }
  0xde   : > { %v336_v38 = vsel %vm329_vm0, %v280_v23, %v324_v34  ;;  %v334_v39 = vsel %vm329_vm0, %v269_v21, %v313_v35 }
  0xdf   : > { %v354_v40 = vcombine.low %v332_v36, %v336_v38  ;;  %v355_v41 = vcombine.high %v332_v36, %v336_v38  ;;  %v338_v42 = vcombine.low %v330_v37, %v334_v39  ;;  %v339_v43 = vcombine.high %v330_v37, %v334_v39 }
  0xe1   : > { %v362_v45 = vrot.slane %v354_v40, %v345_v33  ;;  %v369_v46 = vrot.slane %v355_v41, %v345_v33  ;;  %v346_v47 = vrot.slane %v338_v42, %v345_v33  ;;  %v353_v48 = vrot.slane %v339_v43, %v345_v33  ;;  %v262_v49 = vpop.permute.xlu1 %261  ;;  %v251_v50 = vpop.permute.xlu0 %250 }
  0xe3   : > { %v370_v51 = vcombine.low %v346_v47, %v362_v45  ;;  %v371_v52 = vcombine.high %v346_v47, %v362_v45  ;;  %v386_v57 = vcombine.low %v353_v48, %v369_v46  ;;  %v387_v63 = vcombine.high %v353_v48, %v369_v46 }
  0xe5   : > { %v284_v53 = vpop.permute.xlu1 %283  ;;  %v273_v54 = vpop.permute.xlu0 %272  ;;  %v385_v55 = vrot.slane %v371_v52, %v1159_v44  ;;  %v1163_v56 = vrot.slane %v370_v51, %v1159_v44  ;;  %v394_v62 = vrot.slane %v386_v57, %v1159_v44  ;;  %v401_v3 = vrot.slane %v387_v63, %v1159_v44 }
  0xe7   : > { %479 = vrot.lane.b32.xlu1 %v385_v55, %s953_s21  ;;  %v402_v59 = vcombine.high %v1163_v56, %v954_v58  ;;  %v403_v0 = vcombine.high %v385_v55, %v954_v58  ;;  %v404_v4 = vcombine.high %v394_v62, %v954_v58  ;;  %v405_v15 = vcombine.high %v401_v3, %v954_v58  ;;  %s233_s21 = scalar_lea.vmem [#allocation7], %s1141_s18 }
  0xe9   : > { %v306_v60 = vpop.permute.xlu1 %305  ;;  %475 = vrot.lane.b32.xlu0 %v402_v59, %s955_s19  ;;  %v295_v61 = vpop.permute.xlu0 %294  ;;  %s582_s19 = sshll.u32 %s233_s21, 4  ;;  %s1184_s19 = int_to_ptr.vmem [resolvable:$true] %s582_s19 }
  0xea   : > { %v333_v5 = vsel %vm329_vm0, %v262_v49, %v306_v60  ;;  %v331_v6 = vsel %vm329_vm0, %v251_v50, %v295_v61  ;;  %s861_s18 = scalar_lea.vmem %s1184_s19, 64 }
  0xeb   : > { %487 = vrot.lane.b32.xlu1 %v394_v62, %s956_s20  ;;  %p862_p0 = scmp.ne.s32.totalorder %s1184_s19, %s861_s18 }
  0xed   : > { %v328_v1 = vpop.permute.xlu1 %327  ;;  %483 = vrot.lane.b32.xlu0 %v403_v0, %s957_s30  ;;  %v317_v2 = vpop.permute.xlu0 %316  ;;  %p863_p7 = pnand %p862_p0, %p1246_p5 }
  0xee   : > { %v337_v7 = vsel %vm329_vm0, %v284_v53, %v328_v1  ;;  %v335_v8 = vsel %vm329_vm0, %v273_v54, %v317_v2  ;;  %vm564_vm0 = vcmask 257024  }
  0xef   : > { %v422_v9 = vcombine.low %v333_v5, %v337_v7  ;;  %v423_v10 = vcombine.high %v333_v5, %v337_v7  ;;  %v406_v11 = vcombine.low %v331_v6, %v335_v8  ;;  %v407_v12 = vcombine.high %v331_v6, %v335_v8  ;;  %495 = vrot.lane.b32.xlu1 %v401_v3, %s958_s28  ;;  %s1182_s28 = scalar_lea.hbm %s1233_s2, %s710_s7  ;;  %p864_p4 = pneg %p863_p7 }
  0xf1   : > { %v430_v13 = vrot.slane %v422_v9, %v345_v33  ;;  %v414_v14 = vrot.slane %v406_v11, %v345_v33  ;;  %491 = vrot.lane.b32.xlu0 %v404_v4, %s959_s27  ;;  %v437_v16 = vrot.slane %v423_v10, %v345_v33  ;;  %v421_v17 = vrot.slane %v407_v12, %v345_v33  ;;  %s969_s27 = smov [#allocation7]  }
  0xf3   : > { %v438_v18 = vcombine.low %v414_v14, %v430_v13  ;;  %v439_v19 = vcombine.high %v414_v14, %v430_v13  ;;  %v454_v23 = vcombine.low %v421_v17, %v437_v16  ;;  %v455_v26 = vcombine.high %v421_v17, %v437_v16 }
  0xf5   : > { %499 = vrot.lane.b32.xlu0 %v405_v15, %s960_s29  ;;  %v446_v20 = vrot.slane %v438_v18, %v1159_v44  ;;  %v453_v22 = vrot.slane %v439_v19, %v1159_v44  ;;  %v462_v25 = vrot.slane %v454_v23, %v1159_v44  ;;  %v469_v28 = vrot.slane %v455_v26, %v1159_v44  ;;  %s865_s29 = sshll.u32 %s969_s27, 4  ;;  %s866_s29 = int_to_ptr.vmem [resolvable:$false] %s865_s29 }
  0xf6   : > { %p868_p10 = scmp.lt.s32.totalorder %s1184_s19, %s866_s29 }
  0xf7   : > { %503 = vrot.lane.b32.xlu1 %v446_v20, %s961_s26  ;;  %v470_v21 = vcombine.high %v446_v20, %v954_v58  ;;  %v471_v24 = vcombine.high %v453_v22, %v954_v58  ;;  %v472_v27 = vcombine.high %v462_v25, %v954_v58  ;;  %v473_v29 = vcombine.high %v469_v28, %v954_v58  ;;  %s867_s26 = scalar_lea.vmem %s866_s29, 128 }
  0xf8   : > { %p869_p12 = scmp.lt.s32.totalorder %s867_s26, %s861_s18 }
  0xf9   : > { %507 = vrot.lane.b32.xlu0 %v470_v21, %s962_s25 }
  0xfa   : > { %p870_p1 = por %p869_p12, %p868_p10 }
  0xfb   : > { %511 = vrot.lane.b32.xlu1 %v453_v22, %s963_s3 }
  0xfc   : > { %p871_p2 = pnand %p870_p1, %p864_p4 }
  0xfd   : > { %515 = vrot.lane.b32.xlu0 %v471_v24, %s964_s8 }
  0xff   : > { %519 = vrot.lane.b32.xlu1 %v462_v25, %s965_s15 }
 0x101   : > { %523 = vrot.lane.b32.xlu0 %v472_v27, %s966_s4 }
 0x103   : > { %527 = vrot.lane.b32.xlu1 %v469_v28, %s967_s6 }
 0x105   : > { %531 = vrot.lane.b32.xlu0 %v473_v29, %s968_s5 }
 0x159   : > { %v480_v30 = vpop.permute.xlu1 %479 }
 0x15b   : > { %v476_v31 = vpop.permute.xlu0 %475 }
 0x15c   : > { %v535_v32 = vsel %vm534_vm1, %v1163_v56, %v476_v31 }
 0x15d   : > { %v488_v33 = vpop.permute.xlu1 %487  ;;  %v537_v34 = vsel %vm536_vm2, %v535_v32, %v480_v30 }
 0x15f   : > { %v484_v35 = vpop.permute.xlu0 %483 }
 0x160   : > { %v539_v36 = vsel %vm538_vm3, %v537_v34, %v484_v35 }
 0x161   : > { %v541_v37 = vsel %vm540_vm4, %v539_v36, %v488_v33  ;;  %v496_v40 = vpop.permute.xlu1 %495 }
 0x163   : > { %v492_v38 = vpop.permute.xlu0 %491 }
 0x164   : > { %v543_v39 = vsel %vm542_vm5, %v541_v37, %v492_v38 }
 0x165   : > { %v545_v41 = vsel %vm544_vm6, %v543_v39, %v496_v40 }
 0x167   : > { %v500_v42 = vpop.permute.xlu0 %499 }
 0x168   : > { %v547_v43 = vsel %vm546_vm7, %v545_v41, %v500_v42 }
 0x169   : > { %v504_v44 = vpop.permute.xlu1 %503 }
 0x16a   : > { %v549_v45 = vsel %vm548_vm8, %v547_v43, %v504_v44 }
 0x16b   : > { %v508_v46 = vpop.permute.xlu0 %507 }
 0x16c   : > { %v551_v47 = vsel %vm550_vm9, %v549_v45, %v508_v46 }
 0x16d   : > { %v512_v48 = vpop.permute.xlu1 %511 }
 0x16e   : > { %v553_v49 = vsel %vm552_vm10, %v551_v47, %v512_v48 }
 0x16f   : > { %v516_v50 = vpop.permute.xlu0 %515 }
 0x170   : > { %v555_v51 = vsel %vm554_vm11, %v553_v49, %v516_v50 }
 0x171   : > { %v520_v52 = vpop.permute.xlu1 %519 }
 0x172   : > { %v557_v53 = vsel %vm556_vm12, %v555_v51, %v520_v52 }
 0x173   : > { %v524_v54 = vpop.permute.xlu0 %523 }
 0x174   : > { %v559_v55 = vsel %vm558_vm13, %v557_v53, %v524_v54 }
 0x175   : > { %v528_v56 = vpop.permute.xlu1 %527 }
 0x176   : > { %v561_v57 = vsel %vm560_vm14, %v559_v55, %v528_v56 }
 0x177   : > { %v532_v58 = vpop.permute.xlu0 %531 }
 0x178   : > { %v563_v59 = vsel %vm562_vm15, %v561_v57, %v532_v58 }
 0x179   : > { %565 = vst.msk [vmem:[%s233_s21] sm:$0xf] %vm564_vm0, %v563_v59 }
 0x17a   : > { %874 = shalt.err (!%p871_p2)
}
 0x17b   : > { %s875_s16 = scalar_lea.hbm %s1182_s28, 64  ;;  %s879_s8 = scalar_lea.hbm %s1233_s2, 128 }
 0x17c   : > { %p876_p9 = scmp.ne.s32.totalorder %s1182_s28, %s875_s16  ;;  %p880_p6 = scmp.lt.u32.totalorder %s1182_s28, %s1233_s2 }
 0x17d   : > { %p881_p13 = scmp.lt.u32.totalorder %s879_s8, %s875_s16  ;;  %p883_p0 = scmp.lt.u32.totalorder %s875_s16, %s1182_s28 }
 0x17e   : > { %p877_p11 = pnand %p876_p9, %p1246_p5 }
 0x17f   : > { %p882_p8 = por %p881_p13, %p880_p6 }
 0x180   : > { %p878_p3 = pneg %p877_p11 }
 0x181   : > { %p884_p7 = por %p883_p0, %p882_p8 }
 0x183   : > { %p885_p4 = pnand %p884_p7, %p878_p3 }
 0x185   : > { %888 = shalt.err (!%p885_p4)
}
 0x186   : > { %719 = dma.vmem_to_hbm [thread:$0]  (%p1246_p5), %s1184_s19, 64, %s1182_s28, %s567_s12  }
 0x187 PF: > { %s594_s6 = sand.u32 1, %s927_s9   ;;  %p1247_p10 = scmp.ne.s32.totalorder %s1239_s24, 0 }
 0x188   : > { %p1248_p12 = scmp.ge.s32.totalorder %s947_s14, 2  ;;  %s595_s5 = scalar_lea.sflag [#allocation4], %s594_s6 }
 0x18a   : > { %p729_p1 = pnand %p1248_p12, %p1247_p10 }
 0x18c   : > { %922 = dma.done.wait (!%p729_p1), %s595_s5, 64  }
 0x18d   : > { %924 = vsyncadd (!%p729_p1), %s595_s5, 4294967232  ;;  %s21_s14 = sadd.s32 1, %s947_s14   ;;  %s1249_s9 = smov %s931_s10 }
 0x18e   : > { %p18_p2 = scmp.ge.s32.totalorder %s21_s14, 4   ;;  %s1250_s10 = smov %s935_s11 }
 0x18f   : > { %s1251_s11 = smov %s1041_s23  ;;  %s1252_s12 = smov %s943_s13 }
 0x190   : > { %s1253_s13 = smov %s1255_s17  ;;  %20 = sbr.rel (!%p18_p2) target bundleno = 8 (0x8), region = 86 }
 0x197   :  { %600 = vsyncpa [#allocation3], 1 }
 0x198   :  { %602 = vsyncpa [#allocation3 + $0x1], 1 }
 0x199   :  { %603 = vsyncpa [#allocation6], 1 }
 0x19a   :  { %605 = vsyncpa [#allocation6 + $0x1], 1 }
 0x19b   :  { %606 = vsyncpa [#allocation4], 1 }
 0x19c   :  { %608 = vsyncpa [#allocation4 + $0x1], 1 }

// kernel: tpu_custom_call.1
= control target key start
LH: loop header
LB: loop body
LE: loop exit
PB: predicated region body
PF: predicated region fallthrough
CT: control target
= control target key end

     0   :  { %s1306_s0 = inlined_call_operand.hbm [shape: f32[2,2,4,16], index: 0, kind: input, shape index: {}]   ;;  %s1307_s1 = inlined_call_operand.hbm [shape: f32[2,2,4,16], index: 1, kind: input, shape index: {}]   ;;  %s1308_s2 = inlined_call_operand.hbm [shape: f32[16,32], index: 2, kind: input, shape index: {}]   ;;  %s1309_s3 = inlined_call_operand.hbm [shape: f32[16,32], index: 3, kind: input, shape index: {}]   ;;  %s1310_s4 = inlined_call_operand.hbm [shape: f32[2,4,32], index: 4, kind: output, shape index: {}]  }
   0x1   :  { %1316 = sst [smem:[#allocation17_spill]] %s1308_s2 }
   0x2   :  { %1317 = sst [smem:[#allocation18_spill]] %s1309_s3 }
   0x3   :  { %9 = vsyncpa [#allocation3], 0 }
   0x4   :  { %11 = vsyncpa [#allocation3 + $0x1], 0 }
   0x5   :  { %12 = vsyncpa [#allocation6], 0 }
   0x6   :  { %14 = vsyncpa [#allocation6 + $0x1], 0 }
   0x7   :  { %15 = vsyncpa [#allocation9], 0 }
   0x8   :  { %16 = vsyncpa [#allocation4], 0 }
   0x9   :  { %18 = vsyncpa [#allocation4 + $0x1], 0  ;;  %s1014_s15 = smov 0   ;;  %s1016_s16 = smov 0  }
   0xa   :  { %s1018_s17 = smov 0   ;;  %s1020_s18 = smov 0  }
   0xb   :  { %s1022_s19 = smov 0   ;;  %s1024_s20 = smov 0  }
   0xc LB: > { %s1045_s21 = sadd.s32 4294967295, %s977_s20   ;;  %s621_s22 = sadd.s32 4294967294, %s977_s20   ;;  %s977_s20 = sphi %s1024_s20, %s24_s20   ;;  %s973_s19 = sphi %s1022_s19, %s1342_s19   ;;  %s969_s18 = sphi %s1020_s18, %s1341_s18   ;;  %s965_s17 = sphi %s1018_s17, %s1340_s17   ;;  %s961_s16 = sphi %s1016_s16, %s1339_s16   ;;  %s957_s15 = sphi %s1014_s15, %s1338_s15  }
   0xd   : > { %p67_p0 = scmp.ne.s32.totalorder %s961_s16, %s957_s15  ;;  %p1311_p1 = scmp.eq.s32.totalorder %s1045_s21, 0 }
   0xe   : > { %p173_p3 = scmp.eq.s32.totalorder %s621_s22, 1  ;;  %p622_p5 = scmp.ge.s32.totalorder %s977_s20, 1 }
   0xf   : > { %p1054_p4 = por %p1311_p1, %p67_p0  ;;  %p180_p7 = scmp.lt.s32.totalorder %s977_s20, 3 }
  0x10   : > { %p1059_p6 = por %p173_p3, %p67_p0  ;;  %s979_s26 = smov [#allocation7]  }
  0x11   : > { %s1318_s23 = scalar_select %p1054_p4, 1, 0 }
  0x12   : > { %s1319_s24 = scalar_select %p1059_p6, 1, 0 }
  0x13   : > { %p1064_p8 = pnand %p622_p5, %p180_p7  ;;  %s192_s27 = sshll.u32 %s979_s26, 4  ;;  %s1068_s27 = int_to_ptr.vmem [resolvable:$true] %s192_s27 }
  0x14   : > { %s980_s29 = smov [#allocation8]   ;;  %s1322_s2 = sld [smem:[#allocation17_spill]] }
  0x15   : > { %s1320_s25 = scalar_select %p1064_p8, 1, 0 }
  0x16   : > { %p687_p9 = pneg %p1064_p8  ;;  %s205_s30 = sshll.u32 %s980_s29, 4  ;;  %s1079_s30 = int_to_ptr.vmem [resolvable:$true] %s205_s30 }
  0x18   : > { %p1075_p11 = pnand %p687_p9, %p1311_p1 }
  0x1a   : > { %s766_s7 = scalar_lea.hbm %s1322_s2, 256  ;;  %p768_p13 = pneg %p1075_p11 }
  0x1b   : > { %p767_p12 = scmp.ne.s32.totalorder %s1322_s2, %s766_s7  ;;  %p773_p5 = scmp.lt.u32.totalorder %s766_s7, %s1322_s2 }
  0x1d   : > { %p769_p0 = pnand %p768_p13, %p767_p12 }
  0x1f   : > { %p770_p3 = pneg %p769_p0 }
  0x21   : > { %p775_p7 = pnand %p773_p5, %p770_p3 }
  0x23   : > { %778 = shalt.err (!%p775_p7)
}
  0x24   : > { %s779_s12 = scalar_lea.vmem %s1068_s27, 256  ;;  %p787_p2 = scmp.lt.s32.totalorder %s1068_s27, %s1068_s27 }
  0x25   : > { %p780_p9 = scmp.ne.s32.totalorder %s1068_s27, %s779_s12  ;;  %p788_p12 = scmp.lt.s32.totalorder %s779_s12, %s779_s12 }
  0x27   : > { %p782_p10 = pnand %p780_p9, %p768_p13  ;;  %p789_p0 = por %p788_p12, %p787_p2 }
  0x29   : > { %p783_p1 = pneg %p782_p10 }
  0x2b   : > { %p790_p6 = pnand %p789_p0, %p783_p1 }
  0x2d   : > { %793 = shalt.err (!%p790_p6)
}
  0x2e   : > { %s981_s13 = smov 128   ;;  %s982_s14 = smov 8  }
  0x2f   : > { %690 = dma.hbm_to_vmem [thread:$0]  (!%p1075_p11), %s1322_s2, 256, %s1068_s27, [#allocation6], %s981_s13, %s981_s13, %s982_s14  }
  0x30   : > { %s1323_s3 = sld [smem:[#allocation18_spill]] }
  0x36   : > { %s794_s6 = scalar_lea.hbm %s1323_s3, 256 }
  0x37   : > { %p795_p2 = scmp.ne.s32.totalorder %s1323_s3, %s794_s6  ;;  %p801_p10 = scmp.lt.u32.totalorder %s794_s6, %s1323_s3 }
  0x39   : > { %p797_p1 = pnand %p795_p2, %p768_p13 }
  0x3b   : > { %p798_p6 = pneg %p797_p1 }
  0x3d   : > { %p803_p3 = pnand %p801_p10, %p798_p6 }
  0x3f   : > { %806 = shalt.err (!%p803_p3)
}
  0x40   : > { %s807_s27 = scalar_lea.vmem %s1079_s30, 256  ;;  %p815_p12 = scmp.lt.s32.totalorder %s1079_s30, %s1079_s30 }
  0x41   : > { %p808_p5 = scmp.ne.s32.totalorder %s1079_s30, %s807_s27  ;;  %p816_p0 = scmp.lt.s32.totalorder %s807_s27, %s807_s27 }
  0x43   : > { %p810_p7 = pnand %p808_p5, %p768_p13  ;;  %p817_p2 = por %p816_p0, %p815_p12 }
  0x45   : > { %p811_p9 = pneg %p810_p7 }
  0x47   : > { %p818_p1 = pnand %p817_p2, %p811_p9 }
  0x49   : > { %821 = shalt.err (!%p818_p1)
}
  0x4a   : > { %693 = dma.hbm_to_vmem [thread:$0]  (!%p1075_p11), %s1323_s3, 256, %s1079_s30, [#allocation9], %s981_s13, %s981_s13, %s982_s14  }
  0x4b   : > { %s43_s22 = sadd.s32 1, %s973_s19  ;;  %s54_s26 = sadd.s32 1, %s965_s17 }
  0x4c   : > { %p45_p13 = scmp.ge.s32.totalorder %s43_s22, 2  ;;  %p61_p6 = scmp.ne.s32.totalorder %s965_s17, %s961_s16 }
  0x4d   : > { %p62_p10 = scmp.eq.s32.totalorder %s977_s20, 0  ;;  %p707_p3 = scmp.lt.s32.totalorder %s977_s20, 2 }
  0x4e   : > { %s1344_s22 = smov (%p45_p13, %s43_s22), 0  ;;  %p1325_p7 = scmp.eq.s32.totalorder %s1045_s21, 1 }
  0x4f   : > { %1324 = sst [smem:[#allocation16_spill]] %s1344_s22  ;;  %p63_p5 = por %p62_p10, %p61_p6 }
  0x50   : > { %p1143_p9 = por %p1325_p7, %p61_p6  ;;  %s47_s29 = ssub.s32 %s973_s19, %s1344_s22 }
  0x51   : > { %s219_s5 = sand.u32 1, %s965_s17   ;;  %p52_p12 = scmp.eq.s32.totalorder %s47_s29, 0 }
  0x52   : > { %s1326_s28 = scalar_select %p1143_p9, 1, 0 }
  0x53   : > { %s1150_s30 = sshll.u32 %s219_s5, 2  ;;  %s644_s13 = sshll.u32 %s973_s19, 7 }
  0x54   : > { %s1154_s14 = scalar_select %p52_p12, %s965_s17, %s54_s26  }
  0x55   : > { %s1159_s8 = scalar_lea.hbm %s1306_s0, %s644_s13  ;;  %s223_s9 = scalar_lea.vmem [#allocation2], %s1150_s30 }
  0x56   : > { %s233_s10 = sshll.u32 %s223_s9, 4  ;;  %p1164_p11 = pnand %p707_p3, %p63_p5  ;;  %s1168_s10 = int_to_ptr.vmem [resolvable:$true] %s233_s10 }
  0x57   : > { %s1173_s26 = scalar_lea.hbm %s1307_s1, %s644_s13  ;;  %s220_s29 = scalar_lea.sflag [#allocation3], %s219_s5 }
  0x58   : > { %s822_s6 = scalar_lea.hbm %s1159_s8, 64  ;;  %p824_p2 = pneg %p1164_p11 }
  0x59   : > { %p823_p0 = scmp.ne.s32.totalorder %s1159_s8, %s822_s6  ;;  %s827_s2 = scalar_lea.hbm %s1306_s0, 256 }
  0x5a   : > { %p828_p6 = scmp.lt.u32.totalorder %s1159_s8, %s1306_s0  ;;  %p829_p10 = scmp.lt.u32.totalorder %s827_s2, %s822_s6 }
  0x5b   : > { %p825_p1 = pnand %p824_p2, %p823_p0  ;;  %p831_p5 = scmp.lt.u32.totalorder %s822_s6, %s1159_s8 }
  0x5c   : > { %p830_p3 = por %p829_p10, %p828_p6 }
  0x5d   : > { %p826_p13 = pneg %p825_p1 }
  0x5e   : > { %p832_p7 = por %p831_p5, %p830_p3 }
  0x60   : > { %p833_p12 = pnand %p832_p7, %p826_p13 }
  0x62   : > { %836 = shalt.err (!%p833_p12)
}
  0x63   : > { %s837_s5 = scalar_lea.vmem %s1168_s10, 64  ;;  %s983_s13 = smov [#allocation2]  }
  0x64   : > { %p838_p0 = scmp.ne.s32.totalorder %s1168_s10, %s837_s5  ;;  %s842_s11 = sshll.u32 %s983_s13, 4  ;;  %s843_s11 = int_to_ptr.vmem [resolvable:$false] %s842_s11 }
  0x65   : > { %s844_s3 = scalar_lea.vmem %s843_s11, 128  ;;  %p845_p4 = scmp.lt.s32.totalorder %s1168_s10, %s843_s11 }
  0x66   : > { %p840_p1 = pnand %p838_p0, %p824_p2  ;;  %p846_p6 = scmp.lt.s32.totalorder %s844_s3, %s837_s5 }
  0x68   : > { %p841_p9 = pneg %p840_p1  ;;  %p847_p10 = por %p846_p6, %p845_p4 }
  0x6a   : > { %p848_p3 = pnand %p847_p10, %p841_p9 }
  0x6c   : > { %851 = shalt.err (!%p848_p3)
}
  0x6d   : > { %697 = dma.hbm_to_vmem [thread:$0]  (!%p1164_p11), %s1159_s8, 64, %s1168_s10, %s220_s29  }
  0x6e   : > { %s240_s2 = sand.u32 1, %s977_s20   ;;  %s1202_s22 = scalar_lea.hbm %s1173_s26, 64 }
  0x6f   : > { %s244_s12 = scalar_lea.vmem [#allocation5], %s1150_s30  ;;  %s241_s7 = scalar_lea.sflag [#allocation6], %s240_s2 }
  0x70   : > { %s255_s6 = sshll.u32 %s244_s12, 4  ;;  %s882_s9 = scalar_lea.hbm %s1173_s26, 128  ;;  %s256_s6 = int_to_ptr.vmem [resolvable:$true] %s255_s6 }
  0x71   : > { %p853_p4 = scmp.ne.s32.totalorder %s1202_s22, %s882_s9  ;;  %s857_s8 = scalar_lea.hbm %s1307_s1, 256 }
  0x72   : > { %p858_p5 = scmp.lt.u32.totalorder %s1202_s22, %s1307_s1  ;;  %p859_p7 = scmp.lt.u32.totalorder %s857_s8, %s882_s9 }
  0x73   : > { %p855_p9 = pnand %p853_p4, %p824_p2  ;;  %p861_p0 = scmp.lt.u32.totalorder %s882_s9, %s1202_s22 }
  0x74   : > { %p860_p12 = por %p859_p7, %p858_p5 }
  0x75   : > { %p856_p13 = pneg %p855_p9 }
  0x76   : > { %p862_p1 = por %p861_p0, %p860_p12 }
  0x78   : > { %p863_p6 = pnand %p862_p1, %p856_p13 }
  0x7a   : > { %866 = shalt.err (!%p863_p6)
}
  0x7b   : > { %s867_s30 = scalar_lea.vmem %s256_s6, 64  ;;  %s984_s26 = smov [#allocation5]  }
  0x7c   : > { %p868_p10 = scmp.ne.s32.totalorder %s256_s6, %s867_s30  ;;  %s872_s11 = sshll.u32 %s984_s26, 4  ;;  %s873_s11 = int_to_ptr.vmem [resolvable:$false] %s872_s11 }
  0x7d   : > { %s874_s3 = scalar_lea.vmem %s873_s11, 128  ;;  %p875_p9 = scmp.lt.s32.totalorder %s256_s6, %s873_s11 }
  0x7e   : > { %p870_p3 = pnand %p868_p10, %p824_p2  ;;  %p876_p8 = scmp.lt.s32.totalorder %s874_s3, %s867_s30 }
  0x80   : > { %p871_p4 = pneg %p870_p3  ;;  %p877_p5 = por %p876_p8, %p875_p9 }
  0x82   : > { %p878_p7 = pnand %p877_p5, %p871_p4 }
  0x84   : > { %881 = shalt.err (!%p878_p7)
}
  0x85   : > { %700 = dma.hbm_to_vmem [thread:$0]  (!%p1164_p11), %s1202_s22, 64, %s256_s6, %s241_s7  }
  0x86   : > { %p1328_p13 = scmp.ne.s32.totalorder %s1320_s25, 0 }
  0x87   : > { %s1227_s2 = sand.u32 (!%p1328_p13), 1, %s961_s16   ;;  %p1329_p8 = scmp.ne.s32.totalorder (!%p1328_p13), %s1318_s23, 0 }
  0x88   : > { %264 = sbr.rel (%p1328_p13) target bundleno = 389 (0x185), region = 36  ;;  %s1230_s12 = sshll.u32 (!%p1328_p13), %s1227_s2, 2 }
  0x89   : > { %s267_s9 = scalar_lea.sflag (!%p1328_p13), [#allocation3], %s1227_s2  ;;  %s270_s5 = scalar_lea.vmem (!%p1328_p13), [#allocation2], %s1230_s12 }
  0x8f   : > { %936 = dma.done.wait (%p1329_p8), %s267_s9, 64  }
  0x90   : > { %938 = vsyncadd (%p1329_p8), %s267_s9, 4294967232  ;;  %s275_s25 = sand.u32 1, %s1045_s21   ;;  %s279_s22 = scalar_lea.vmem [#allocation5], %s1230_s12 }
  0x91   : > { %s276_s27 = scalar_lea.sflag [#allocation6], %s275_s25 }
  0x92   : > { %940 = dma.done.wait (%p1329_p8), %s276_s27, 64  }
  0x93   : > { %942 = vsyncadd (%p1329_p8), %s276_s27, 4294967232  ;;  %p1330_p11 = scmp.eq.s32.totalorder %s1045_s21, 0 }
  0x95   : > { %944 = dma.done.wait (%p1330_p11), [#allocation6], 256   ;;  %p1331_p2 = pmov %p1330_p11 }
  0x97   : > { %946 = vsyncadd (%p1331_p2), [#allocation6], 4294967040  ;;  %p1332_p12 = pmov %p1331_p2 }
  0x98   : > { %p1333_p0 = pmov %p1331_p2 }
  0x99   : > { %948 = dma.done.wait (%p1332_p12), [#allocation9], 256  }
  0x9a   : > { %950 = vsyncadd (%p1333_p0), [#allocation9], 4294967040  ;;  %v985_v0 = vmov 0.0|0.0   ;;  %vm986_vm0 = vmmov 0   ;;  %v987_v1 = vmov 0.0   ;;  %v321_v2 = vld [vmem:[#allocation8] sm:$0xff] }
  0x9b   : > { %666 = vmatprep.subr.bf16.mxu1 %v985_v0  ;;  %669 = vmatprep.subr.bf16.mxu0 %v985_v0  ;;  %v322_v3 = vld [vmem:[#allocation8 + $0x8] sm:$0xff]  ;;  %v319_v4 = vld [vmem:[#allocation7] sm:$0xff]  ;;  %v320_v6 = vld [vmem:[#allocation7 + $0x8] sm:$0xff]  ;;  %vm323_vm1 = vcmask 130048   ;;  %s641_s21 = sshll.u32 %s969_s18, 6  ;;  %s316_s23 = scalar_lea.vmem [#allocation10], %s1230_s12 }
  0x9c   : > { %656 = vmatprep.mubr.msk.f32.mxu1 %vm986_vm0, %v987_v1  ;;  %663 = vmatprep.mubr.msk.f32.mxu0 %vm986_vm0, %v987_v1  ;;  %v667_v5 = vpack.c.bf16 %v322_v3, %v321_v2  ;;  %v670_v7 = vpack.c.bf16 %v320_v6, %v319_v4  ;;  %v318_v8 = vld [vmem:[%s279_s22] sm:$0xf]  ;;  %v317_v9 = vld [vmem:[%s270_s5] sm:$0xf]  ;;  %s488_s6 = sshll.u32 %s316_s23, 4  ;;  %vm470_vm2 = vcmask 257024   ;;  %s1257_s8 = scalar_lea.hbm %s1310_s4, %s641_s21  ;;  %s1259_s6 = int_to_ptr.vmem [resolvable:$true] %s488_s6 }
  0x9d   : > { %s473_s18 = scalar_lea.sflag [#allocation4], %s1227_s2  ;;  %s883_s10 = scalar_lea.vmem %s1259_s6, 64 }
  0x9e   : > { %668 = vmatpush3.bf16.msra.mxu1 %v667_v5  ;;  %671 = vmatpush3.bf16.msra.mxu0 %v670_v7  ;;  %p884_p1 = scmp.ne.s32.totalorder %s1259_s6, %s883_s10  ;;  %p1334_p6 = scmp.ne.s32.totalorder %s1326_s28, 0 }
  0x9f   : > { %s988_s29 = smov [#allocation10]  }
  0xa0   : > { %p885_p10 = pnand %p884_p1, %p1334_p6  ;;  %s887_s30 = sshll.u32 %s988_s29, 4  ;;  %s888_s30 = int_to_ptr.vmem [resolvable:$false] %s887_s30 }
  0xa1   : > { %657 = vmatmul.mubr.msk.f32.vlgmr.msra.gmra.mrb[0].mxu1 %vm323_vm1, %v318_v8  ;;  %664 = vmatmul.mubr.msk.f32.vlgmr.msra.gmra.mrb[0].mxu0 %vm323_vm1, %v317_v9  ;;  %s889_s26 = scalar_lea.vmem %s888_s30, 128  ;;  %p890_p4 = scmp.lt.s32.totalorder %s1259_s6, %s888_s30 }
  0xa2   : > { %p886_p3 = pneg %p885_p10  ;;  %p891_p9 = scmp.lt.s32.totalorder %s889_s26, %s883_s10 }
  0xa4   : > { %p892_p5 = por %p891_p9, %p890_p4 }
  0xa6   : > { %p893_p7 = pnand %p892_p5, %p886_p3 }
 0x174   : > { %v393_v10 = vpop.f32.mrb[0].mxu1  ;;  %v466_v11 = vpop.f32.mrb[0].mxu0 }
 0x175   : > { %v658_v12 = vpop.f32.mrb[1].mxu1  ;;  %v467_v13 = vadd.f32 %v466_v11, %v393_v10  ;;  %v665_v14 = vpop.f32.mrb[1].mxu0 }
 0x177   : > { %471 = vst.msk [vmem:[%s316_s23] sm:$0xf] %vm470_vm2, %v467_v13 }
 0x178   : > { %896 = shalt.err (!%p893_p7)
}
 0x179   : > { %s897_s11 = scalar_lea.hbm %s1257_s8, 64  ;;  %s901_s12 = scalar_lea.hbm %s1310_s4, 128 }
 0x17a   : > { %p898_p13 = scmp.ne.s32.totalorder %s1257_s8, %s897_s11  ;;  %p902_p2 = scmp.lt.u32.totalorder %s1257_s8, %s1310_s4 }
 0x17b   : > { %p903_p12 = scmp.lt.u32.totalorder %s901_s12, %s897_s11  ;;  %p905_p1 = scmp.lt.u32.totalorder %s897_s11, %s1257_s8 }
 0x17c   : > { %p899_p8 = pnand %p898_p13, %p1334_p6 }
 0x17d   : > { %p904_p0 = por %p903_p12, %p902_p2 }
 0x17e   : > { %p900_p11 = pneg %p899_p8 }
 0x17f   : > { %p906_p10 = por %p905_p1, %p904_p0 }
 0x181   : > { %p907_p3 = pnand %p906_p10, %p900_p11 }
 0x183   : > { %910 = shalt.err (!%p907_p3)
}
 0x184   : > { %685 = dma.vmem_to_hbm [thread:$0]  (%p1334_p6), %s1259_s6, 64, %s1257_s8, %s473_s18  }
 0x185 PF: > { %s500_s25 = sand.u32 1, %s957_s15   ;;  %p1335_p4 = scmp.ne.s32.totalorder %s1319_s24, 0 }
 0x186   : > { %p1336_p9 = scmp.ge.s32.totalorder %s977_s20, 2  ;;  %s501_s27 = scalar_lea.sflag [#allocation4], %s500_s25 }
 0x188   : > { %p702_p5 = pnand %p1336_p9, %p1335_p4 }
 0x18a   : > { %952 = dma.done.wait (!%p702_p5), %s501_s27, 64  }
 0x18b   : > { %954 = vsyncadd (!%p702_p5), %s501_s27, 4294967232  ;;  %s24_s20 = sadd.s32 1, %s977_s20   ;;  %s1337_s28 = sld [smem:[#allocation16_spill]] }
 0x18c   : > { %p21_p7 = scmp.ge.s32.totalorder %s24_s20, 4   ;;  %s1338_s15 = smov %s961_s16 }
 0x18d   : > { %s1339_s16 = smov %s965_s17  ;;  %s1340_s17 = smov %s1154_s14 }
 0x18e   : > { %s1341_s18 = smov %s973_s19  ;;  %23 = sbr.rel (!%p21_p7) target bundleno = 12 (0xc), region = 102 }
 0x191   : > { %s1342_s19 = smov %s1337_s28 }
 0x195   :  { %506 = vsyncpa [#allocation3], 1 }
 0x196   :  { %508 = vsyncpa [#allocation3 + $0x1], 1 }
 0x197   :  { %509 = vsyncpa [#allocation6], 1 }
 0x198   :  { %511 = vsyncpa [#allocation6 + $0x1], 1 }
 0x199   :  { %512 = vsyncpa [#allocation9], 1 }
 0x19a   :  { %513 = vsyncpa [#allocation4], 1 }
 0x19b   :  { %515 = vsyncpa [#allocation4 + $0x1], 1 }

</bundles_post_ra>
